<compile_context>
chip_gen: v5e
topology: v5e:2x2
jax: 0.10.0
libtpu: 0.0.40
codegen_flags: <defaults>
</compile_context>

<pallas_src>
import jax
import jax.numpy as jnp
from jax.experimental import pallas as pl
from jax.experimental.pallas import tpu as pltpu

_LANE_TILE = 8192  # flattened batch*time lanes per grid step (~256 KiB f32 input tile)


def _vdn_mix_kernel(q_ref, o_ref):
    """q_ref: [N, TL] lane-dense tile in VMEM; o_ref: [1, TL].

    Sum the tiny agent (sublane) axis with statically unrolled VPU adds,
    accumulating in float32, then cast to the output dtype on store.
    """
    n = q_ref.shape[0]
    acc = q_ref[pl.ds(0, 1), :].astype(jnp.float32)            # (1, TL)
    for i in range(1, n):                                       # N is tiny & static
        acc = acc + q_ref[pl.ds(i, 1), :].astype(jnp.float32)
    o_ref[...] = acc.astype(o_ref.dtype)


def vdn_mixer_forward(agent_qs, states=None, *, lane_tile=_LANE_TILE):
    """Pallas equivalent of VDNMixer.forward.

    agent_qs: [batch, time, n_agents] float array.
    states:   unused (kept for signature parity with the PyTorch module).
    returns:  [batch, time, 1] array, same dtype as agent_qs.
    """
    del states  # VDN ignores the global state.
    B, T, N = agent_qs.shape
    L = B * T
    dtype = agent_qs.dtype

    # Layout plumbing (wrapper side): agent axis -> sublanes, batch*time -> lanes.
    x = jnp.transpose(agent_qs.reshape(L, N), (1, 0))           # [N, L]

    if L <= lane_tile:
        # Single full-extent block: last two block dims equal the array dims,
        # which is valid for any (even non-128-multiple) L.
        tl = L
        l_pad = L
    else:
        tl = lane_tile                                          # multiple of 128
        l_pad = pl.cdiv(L, tl) * tl
        if l_pad != L:
            x = jnp.pad(x, ((0, 0), (0, l_pad - L)))            # zero-pad lanes

    grid = (l_pad // tl,)

    out2d = pl.pallas_call(
        _vdn_mix_kernel,
        out_shape=jax.ShapeDtypeStruct((1, l_pad), dtype),
        grid=grid,
        in_specs=[pl.BlockSpec((N, tl), lambda i: (0, i))],
        out_specs=pl.BlockSpec((1, tl), lambda i: (0, i)),
        compiler_params=pltpu.CompilerParams(
            # Independent tiles: shard across both TensorCores on v7x.
            dimension_semantics=("parallel",),
        ),
    )(x)

    # Drop any lane padding and re-add the keepdim-1 axis (free reshape).
    return out2d[0, :L].reshape(B, T, 1)


if __name__ == "__main__":
    key = jax.random.PRNGKey(0)
    k1, k2, k3 = jax.random.split(key, 3)

    batch, time, n_agents = 2, 8, 4
    state_dim = 16

    agent_qs = jax.random.normal(k1, (batch, time, n_agents), dtype=jnp.float32)
    states = jax.random.normal(k2, (batch, time, state_dim), dtype=jnp.float32)

    out = jax.block_until_ready(vdn_mixer_forward(agent_qs, states))
    ref = jnp.sum(agent_qs, axis=2, keepdims=True)
    assert out.shape == (batch, time, 1), out.shape
    assert out.dtype == agent_qs.dtype, out.dtype
    assert jnp.allclose(out, ref, atol=1e-6), "mismatch vs reference (demo shape)"

    # Second small check with odd, non-128-multiple flattened length.
    q2 = jax.random.normal(k3, (3, 50, 5), dtype=jnp.float32)
    out2 = jax.block_until_ready(vdn_mixer_forward(q2))
    ref2 = jnp.sum(q2, axis=2, keepdims=True)
    assert out2.shape == (3, 50, 1), out2.shape
    assert jnp.allclose(out2, ref2, atol=1e-6), "mismatch vs reference (odd shape)"

    print("KERNEL_OK")
</pallas_src>

<mosaic_0001>
module attributes {stable_mosaic.version = 11 : i64} {
  func.func @_vdn_mix_kernel(%arg0: i32, %arg1: memref<4x16xf32, #tpu.memory_space<vmem>>, %arg2: memref<1x16xf32, #tpu.memory_space<vmem>>) attributes {dimension_semantics = [#tpu.dimension_semantics<parallel>], iteration_bounds = array<i64: 1>, scalar_prefetch = 0 : i64, scratch_operands = 0 : i64, tpu.core_type = #tpu.core_type<tc>, window_params = [{transform_indices = @transform_0, window_bounds = array<i64: 4, 16>}, {transform_indices = @transform_1, window_bounds = array<i64: 1, 16>}]} {
    %c0 = arith.constant 0 : index
    %c0_0 = arith.constant 0 : index
    %0 = vector.load %arg1[%c0, %c0_0] : memref<4x16xf32, #tpu.memory_space<vmem>>, vector<1x16xf32>
    %c1 = arith.constant 1 : index
    %c0_1 = arith.constant 0 : index
    %1 = vector.load %arg1[%c1, %c0_1] : memref<4x16xf32, #tpu.memory_space<vmem>>, vector<1x16xf32>
    %2 = arith.addf %0, %1 : vector<1x16xf32>
    %c2 = arith.constant 2 : index
    %c0_2 = arith.constant 0 : index
    %3 = vector.load %arg1[%c2, %c0_2] : memref<4x16xf32, #tpu.memory_space<vmem>>, vector<1x16xf32>
    %4 = arith.addf %2, %3 : vector<1x16xf32>
    %c3 = arith.constant 3 : index
    %c0_3 = arith.constant 0 : index
    %5 = vector.load %arg1[%c3, %c0_3] : memref<4x16xf32, #tpu.memory_space<vmem>>, vector<1x16xf32>
    %6 = arith.addf %4, %5 : vector<1x16xf32>
    %c0_4 = arith.constant 0 : index
    %c0_5 = arith.constant 0 : index
    %7 = vector.load %arg2[%c0_4, %c0_5] : memref<1x16xf32, #tpu.memory_space<vmem>>, vector<1x16xf32>
    tpu.vector_store %arg2[%c0_4, %c0_5], %6 {strides = array<i32>} : memref<1x16xf32, #tpu.memory_space<vmem>>, vector<1x16xf32>,
    return
  }
  func.func @transform_0(%arg0: i32) -> (i32, i32) {
    %c0_i32 = arith.constant 0 : i32
    %c0_i32_0 = arith.constant 0 : i32
    return %c0_i32, %arg0 : i32, i32
  }
  func.func @transform_1(%arg0: i32) -> (i32, i32) {
    %c0_i32 = arith.constant 0 : i32
    %c0_i32_0 = arith.constant 0 : i32
    return %c0_i32, %arg0 : i32, i32
  }
}

</mosaic_0001>

<bundles_post_ra>
// kernel: tpu_custom_call.1
= control target key start
LH: loop header
LB: loop body
LE: loop exit
PB: predicated region body
PF: predicated region fallthrough
CT: control target
= control target key end

     0   :  { %6 = vsyncpa [#allocation3], 0  ;;  %s121_s0 = inlined_call_operand.hbm [shape: f32[4,16], index: 0, kind: input, shape index: {}]   ;;  %s122_s1 = inlined_call_operand.hbm [shape: f32[1,16], index: 1, kind: output, shape index: {}]  }
   0x1   :  { %7 = vsyncpa [#allocation4], 0  ;;  %s13_s8 = sshll.u32 %s121_s0, 4  ;;  %s103_s9 = smov [#allocation2]   ;;  %s14_s8 = int_to_ptr.hbm [resolvable:$true] %s13_s8 }
   0x2   :  { %s15_s10 = sshll.u32 %s103_s9, 4  ;;  %s16_s10 = int_to_ptr.vmem [resolvable:$true] %s15_s10 }
   0x3   :  { %18 = dma.hbm_to_vmem [thread:$0]  %s14_s8, 64, %s16_s10, [#allocation3]  }
   0x4   :  { %99 = dma.done.wait [#allocation3], 64  }
   0x5   :  { %100 = vsyncadd [#allocation3], 4294967232  ;;  %v23_v0 = vld [vmem:[#allocation2] sm:$0x1]  ;;  %v24_v1 = vld [vmem:[#allocation2 + $0x1] sm:$0x1] }
   0x6   :  { %v26_v2 = vld [vmem:[#allocation2 + $0x2] sm:$0x1]  ;;  %v25_v3 = vadd.f32 %v24_v1, %v23_v0  ;;  %v28_v4 = vld [vmem:[#allocation2 + $0x3] sm:$0x1]  ;;  %s104_s11 = smov [#allocation5]   ;;  %s39_s15 = sshll.u32 %s122_s1, 4  ;;  %s40_s15 = int_to_ptr.hbm [resolvable:$true] %s39_s15 }
   0x7   :  { %s37_s12 = sshll.u32 %s104_s11, 4  ;;  %vm30_vm0 = vcmask 122880   ;;  %s38_s12 = int_to_ptr.vmem [resolvable:$true] %s37_s12 }
   0x8   :  { %v27_v5 = vadd.f32 %v26_v2, %v25_v3 }
   0xa   :  { %v29_v6 = vadd.f32 %v28_v4, %v27_v5 }
   0xc   :  { %31 = vst.msk [vmem:[#allocation5] sm:$0x1] %vm30_vm0, %v29_v6 }
   0xd   :  { %42 = dma.vmem_to_hbm [thread:$0]  %s38_s12, 16, %s40_s15, [#allocation4]  }
   0xe   :  { %101 = dma.done.wait [#allocation4], 16  }
   0xf   :  { %102 = vsyncadd [#allocation4], 4294967280 }
  0x10   :  { %47 = vsyncpa [#allocation3], 1 }
  0x11   :  { %48 = vsyncpa [#allocation4], 1 }

</bundles_post_ra>
